<compile_context>
chip_gen: v7x
topology: tpu7x:2x2x1
jax: 0.10.0
libtpu: 0.0.40
codegen_flags: <defaults>
</compile_context>

<pallas_src>
import functools

import numpy as np

import jax
import jax.numpy as jnp
from jax import lax
from jax.experimental import pallas as pl
from jax.experimental.pallas import tpu as pltpu

_TILE_B = 128      # batch rows per grid step (sublane/lane friendly, v5e-safe)
_MIN_PALLAS = 128  # below this the kernel is overhead-bound -> use plain XLA


def _emd_loss_kernel(pred_ref, out_ref, *, matmul_dtype):
    """One batch tile: cdf_pred via a single MXU matmul + closed-form target."""
    tile_b, bins = pred_ref.shape
    row0 = pl.program_id(0) * tile_b          # global batch row of this tile

    # U[i, j] = (j >= i): upper-triangular all-ones matrix, built in-register.
    rows = lax.broadcasted_iota(jnp.int32, (bins, bins), 0)
    cols = lax.broadcasted_iota(jnp.int32, (bins, bins), 1)
    u = (cols >= rows).astype(jnp.float32)

    pred = pred_ref[...]                      # already f32; no redundant cast
    if np.dtype(matmul_dtype) != np.dtype(jnp.float32):
        pred = pred.astype(matmul_dtype)      # bf16 MXU operands (v5e/v6e)
        u = u.astype(matmul_dtype)            # 0/1 is exact in bf16

    # cdf_pred = pred @ U (running cumulative sum over bins); f32 accumulation.
    cdf_pred = jnp.dot(pred, u, preferred_element_type=jnp.float32)

    # cdf_target = (U @ U)[row0 + r, j] = max(j - (row0 + r) + 1, 0): closed
    # form — no second matmul, and trivially tileable along the batch axis.
    t_rows = lax.broadcasted_iota(jnp.int32, (tile_b, bins), 0) + row0
    t_cols = lax.broadcasted_iota(jnp.int32, (tile_b, bins), 1)
    cdf_target = jnp.maximum(t_cols - t_rows + 1, 0).astype(jnp.float32)

    diff = cdf_pred - cdf_target
    out_ref[...] = jnp.sum(diff * diff, axis=1, keepdims=True)


@jax.jit
def _emd_loss_small(pred):
    """Fused XLA path for tiny problems (Pallas would be overhead-bound)."""
    bins = pred.shape[1]
    cdf_pred = jnp.cumsum(pred, axis=1)                        # == pred @ U
    j = jnp.arange(bins)[None, :]
    i = jnp.arange(bins)[:, None]
    cdf_target = jnp.maximum(j - i + 1, 0).astype(pred.dtype)  # == U @ U
    diff = cdf_pred - cdf_target
    return jnp.sum(diff * diff, axis=1)


def emd_loss(pred, target=None, *, matmul_dtype=jnp.float32):
    """EMDLoss.forward(pred, target).

    `target` is accepted for signature fidelity but unused: the reference
    PyTorch module overwrites it with the triangular matrix before any use.
    """
    del target
    pred = jnp.asarray(pred, jnp.float32)
    b, bins = pred.shape
    if b == 1:
        # torch broadcast case: (1, bins) - (bins, bins) -> loss shape (bins,)
        pred = jnp.broadcast_to(pred, (bins, bins))
        b = bins
    if b != bins:
        raise ValueError(
            "EMDLoss broadcast requires batch == bins (or batch == 1); got "
            f"batch={b}, bins={bins} (same constraint as the torch module).")

    if b < _MIN_PALLAS or bins < _MIN_PALLAS:
        return _emd_loss_small(pred)

    num_tiles = pl.cdiv(b, _TILE_B)
    b_pad = num_tiles * _TILE_B
    if b_pad != b:  # pad batch rows up to a tile multiple; extras discarded
        pred = jnp.pad(pred, ((0, b_pad - b), (0, 0)))

    kernel = functools.partial(_emd_loss_kernel, matmul_dtype=matmul_dtype)
    out = pl.pallas_call(
        kernel,
        out_shape=jax.ShapeDtypeStruct((b_pad, 1), jnp.float32),
        grid=(num_tiles,),
        in_specs=[pl.BlockSpec((_TILE_B, bins), lambda i: (i, 0))],
        out_specs=pl.BlockSpec((_TILE_B, 1), lambda i: (i, 0)),
        compiler_params=pltpu.CompilerParams(
            dimension_semantics=("parallel",),        # shard over v7x's 2 TCs
            vmem_limit_bytes=48 * 1024 * 1024,        # headroom under v7x 64MiB
        ),
        cost_estimate=pl.CostEstimate(
            flops=2 * b_pad * bins * bins + 3 * b_pad * bins,
            transcendentals=0,
            bytes_accessed=b_pad * bins * 4 + b_pad * 4,
        ),
    )(pred)
    return out[:b, 0]


def emd_loss_ref(pred):
    """float64 numpy reference mirroring the torch code, for verification."""
    p = np.asarray(pred, np.float64)
    bins = p.shape[1]
    rng = np.arange(bins)
    u = (rng[None, :] >= rng[:, None]).astype(np.float64)
    cdf_pred = p @ u
    cdf_target = u @ u
    return np.sum((cdf_pred - cdf_target) ** 2, axis=1)


if __name__ == "__main__":
    key = jax.random.PRNGKey(0)
    k1, k2, k3 = jax.random.split(key, 3)

    # B must equal bins for the (B, bins) vs (bins, bins) broadcast, exactly
    # as in the original torch module.  256 histogram bins -> 2 batch tiles.
    B = BINS = 256
    pred = jax.nn.softmax(jax.random.normal(k1, (B, BINS), jnp.float32), -1)
    target = jax.nn.softmax(jax.random.normal(k2, (B, BINS), jnp.float32), -1)

    loss = jax.block_until_ready(emd_loss(pred, target))
    ref = emd_loss_ref(pred)
    assert loss.shape == (B,)
    # Tolerance covers TPU MXU f32-emulation accumulation-order differences.
    assert np.allclose(np.asarray(loss), ref, rtol=2e-2, atol=1e-2)

    # Padding path: batch not a multiple of the 128-row tile (320 -> 384).
    B2 = 320
    pred2 = jax.nn.softmax(jax.random.normal(k3, (B2, B2), jnp.float32), -1)
    loss2 = jax.block_until_ready(emd_loss(pred2, pred2))
    assert loss2.shape == (B2,)
    assert np.allclose(np.asarray(loss2), emd_loss_ref(pred2), rtol=2e-2, atol=1e-2)

    # bf16 MXU-operand option (v5e/v6e throughput); U exact in bf16, f32 accum.
    loss_bf16 = jax.block_until_ready(
        emd_loss(pred, target, matmul_dtype=jnp.bfloat16))
    assert np.allclose(np.asarray(loss_bf16), ref, rtol=5e-2, atol=1.0)

    # Tiny-shape dispatch (fused jitted JAX, no Pallas overhead).
    B3 = 8
    pred3 = jax.nn.softmax(jax.random.normal(k1, (B3, B3), jnp.float32), -1)
    loss3 = jax.block_until_ready(emd_loss(pred3, pred3))
    assert loss3.shape == (B3,)
    assert np.allclose(np.asarray(loss3), emd_loss_ref(pred3), rtol=1e-4, atol=1e-4)

    print("KERNEL_OK")
</pallas_src>

<mosaic_0001>
module attributes {stable_mosaic.version = 11 : i64} {
  func.func @_emd_loss_kernel(%arg0: i32, %arg1: memref<128x256xf32, #tpu.memory_space<vmem>>, %arg2: memref<128x1xf32, #tpu.memory_space<vmem>>) attributes {dimension_semantics = [#tpu.dimension_semantics<parallel>], iteration_bounds = array<i64: 2>, scalar_prefetch = 0 : i64, scratch_operands = 0 : i64, tpu.core_type = #tpu.core_type<tc>, window_params = [{transform_indices = @transform_0, window_bounds = array<i64: 128, 256>}, {transform_indices = @transform_1, window_bounds = array<i64: 128, 1>}]} {
    %c128_i32 = arith.constant 128 : i32
    %0 = arith.muli %arg0, %c128_i32 : i32
    %1 = tpu.iota {dimensions = array<i32: 0>} : vector<256x256xi32>
    %2 = tpu.iota {dimensions = array<i32: 1>} : vector<256x256xi32>
    %3 = arith.cmpi sge, %2, %1 : vector<256x256xi32>
    %4 = arith.extui %3 : vector<256x256xi1> to vector<256x256xi32>
    %5 = arith.sitofp %4 : vector<256x256xi32> to vector<256x256xf32>
    %c0 = arith.constant 0 : index
    %c0_0 = arith.constant 0 : index
    %6 = vector.load %arg1[%c0, %c0_0] : memref<128x256xf32, #tpu.memory_space<vmem>>, vector<128x256xf32>
    %cst = arith.constant dense<0.000000e+00> : vector<128x256xf32>
    %7 = tpu.matmul %6, %5, %cst {dimension_numbers = #tpu.dot_dimension_numbers<[1], [0], [0], [1], [0, 0, 1, 1], [], []>} : vector<128x256xf32>, vector<256x256xf32>, vector<128x256xf32> -> vector<128x256xf32>
    %8 = tpu.iota {dimensions = array<i32: 0>} : vector<128x256xi32>
    %9 = vector.broadcast %0 : i32 to vector<128x256xi32>
    %10 = arith.addi %8, %9 : vector<128x256xi32>
    %11 = tpu.iota {dimensions = array<i32: 1>} : vector<128x256xi32>
    %12 = arith.subi %11, %10 : vector<128x256xi32>
    %c1_i32 = arith.constant 1 : i32
    %13 = vector.broadcast %c1_i32 : i32 to vector<128x256xi32>
    %14 = arith.addi %12, %13 : vector<128x256xi32>
    %c0_i32 = arith.constant 0 : i32
    %15 = vector.broadcast %c0_i32 : i32 to vector<128x256xi32>
    %16 = arith.maxsi %14, %15 : vector<128x256xi32>
    %17 = arith.sitofp %16 : vector<128x256xi32> to vector<128x256xf32>
    %18 = arith.subf %7, %17 : vector<128x256xf32>
    %19 = arith.mulf %18, %18 : vector<128x256xf32>
    %cst_1 = arith.constant dense<0.000000e+00> : vector<128xf32>
    %20 = vector.multi_reduction <add>, %19, %cst_1 [1] : vector<128x256xf32> to vector<128xf32>
    %21 = vector.shape_cast %20 : vector<128xf32> to vector<128x1xf32>
    %c0_2 = arith.constant 0 : index
    %c0_3 = arith.constant 0 : index
    %22 = vector.load %arg2[%c0_2, %c0_3] : memref<128x1xf32, #tpu.memory_space<vmem>>, vector<128x1xf32>
    tpu.vector_store %arg2[%c0_2, %c0_3], %21 {strides = array<i32>} : memref<128x1xf32, #tpu.memory_space<vmem>>, vector<128x1xf32>,
    return
  }
  func.func @transform_0(%arg0: i32) -> (i32, i32) {
    %c0_i32 = arith.constant 0 : i32
    %c0_i32_0 = arith.constant 0 : i32
    return %arg0, %c0_i32 : i32, i32
  }
  func.func @transform_1(%arg0: i32) -> (i32, i32) {
    %c0_i32 = arith.constant 0 : i32
    %c0_i32_0 = arith.constant 0 : i32
    return %arg0, %c0_i32 : i32, i32
  }
}

</mosaic_0001>

<bundles_post_ra>
// kernel: tpu_custom_call.1
= control target key start
LH: loop header
LB: loop body
LE: loop exit
PB: predicated region body
PF: predicated region fallthrough
CT: control target
= control target key end

     0   :  { %6 = vsyncpa [#allocation3], 0  ;;  %s1799_s0 = inlined_call_operand.hbm [shape: f32[256,256], index: 0, kind: input, shape index: {}]   ;;  %s1800_s1 = inlined_call_operand.vmem [shape: f32[256,1], index: 1, kind: output, shape index: {}]  }
   0x1   :  { %8 = vsyncpa [#allocation3 + $0x1], 0  ;;  %s1284_s6 = smov 0   ;;  %s1286_s7 = smov 0  }
   0x2   :  { %s1288_s8 = smov 0   ;;  %s1290_s9 = smov 0  }
   0x3 LB: > { %s1303_s10 = sadd.s32 4294967295, %s1267_s9   ;;  %s1306_s11 = sadd.s32 1, %s1267_s9   ;;  %s1267_s9 = sphi %s1290_s9, %s1807_s9   ;;  %s1263_s8 = sphi %s1288_s8, %s1806_s8   ;;  %s1259_s7 = sphi %s1286_s7, %s1805_s7   ;;  %s1255_s6 = sphi %s1284_s6, %s1804_s6  }
   0x4   : > { %s18_s12 = ssub.s32 %s1267_s9, %s1306_s11  ;;  %s21_s13 = sadd.s32 1, %s1263_s8 }
   0x5   : > { %p19_p0 = scmp.eq.s32.totalorder %s18_s12, 0  ;;  %p28_p1 = scmp.ne.s32.totalorder %s1263_s8, %s1259_s7 }
   0x6   : > { %p29_p2 = scmp.eq.s32.totalorder %s1267_s9, 0  ;;  %p34_p3 = scmp.ne.s32.totalorder %s1259_s7, %s1255_s6 }
   0x7   : > { %s1316_s14 = scalar_select %p19_p0, %s1263_s8, %s21_s13  }
   0x8   : > { %p30_p4 = por %p29_p2, %p28_p1  ;;  %p35_p5 = scmp.eq.s32.totalorder %s1303_s10, 0 }
   0x9   : > { %p1166_p6 = scmp.lt.s32.totalorder %s1267_s9, 2  ;;  %s84_s16 = sand.u32 1, %s1263_s8  }
   0xa   : > { %p1320_p7 = por %p35_p5, %p34_p3  ;;  %s939_s17 = sshll.u32 %s84_s16, 8 }
   0xb   : > { %s1079_s18 = sshll.u32 %s1267_s9, 12  ;;  %s88_s22 = scalar_lea.vmem [#allocation2], %s939_s17 }
   0xc   : > { %s1329_s21 = scalar_lea.hbm %s1799_s0, %s1079_s18  ;;  %s96_s23 = sshll.u32 %s88_s22, 4  ;;  %s1331_s23 = int_to_ptr.vmem [resolvable:$true] %s96_s23 }
   0xd   : > { %p1333_p8 = pnand %p1166_p6, %p30_p4  ;;  %s1338_s25 = scalar_lea.sflag [#allocation3], %s84_s16 }
   0xe   : > { %s1203_s26 = scalar_lea.hbm %s1329_s21, 4096  ;;  %s1208_s29 = scalar_lea.hbm %s1799_s0, 8192 }
   0xf   : > { %p1204_p10 = scmp.ne.s32.totalorder %s1329_s21, %s1203_s26  ;;  %p1205_p11 = pneg %p1333_p8 }
  0x10   : > { %p1209_p0 = scmp.lt.u32.totalorder %s1329_s21, %s1799_s0  ;;  %p1210_p1 = scmp.lt.u32.totalorder %s1208_s29, %s1203_s26 }
  0x11   : > { %p1206_p12 = pnand %p1205_p11, %p1204_p10  ;;  %p1212_p3 = scmp.lt.u32.totalorder %s1203_s26, %s1329_s21 }
  0x12   : > { %p1211_p2 = por %p1210_p1, %p1209_p0 }
  0x13   : > { %p1207_p13 = pneg %p1206_p12 }
  0x14   : > { %p1213_p4 = por %p1212_p3, %p1211_p2 }
  0x16   : > { %p1214_p5 = pnand %p1213_p4, %p1207_p13 }
  0x18   : > { %1217 = shalt.err (!%p1214_p5)
}
  0x19   : > { %s1218_s3 = scalar_lea.vmem %s1331_s23, 4096  ;;  %s1269_s4 = smov [#allocation2]  }
  0x1a   : > { %p1219_p6 = scmp.ne.s32.totalorder %s1331_s23, %s1218_s3  ;;  %s1223_s5 = sshll.u32 %s1269_s4, 4  ;;  %s1224_s5 = int_to_ptr.vmem [resolvable:$false] %s1223_s5 }
  0x1b   : > { %s1225_s6 = scalar_lea.vmem %s1224_s5, 8192  ;;  %p1226_p9 = scmp.lt.s32.totalorder %s1331_s23, %s1224_s5 }
  0x1c   : > { %p1221_p10 = pnand %p1219_p6, %p1205_p11  ;;  %p1227_p0 = scmp.lt.s32.totalorder %s1225_s6, %s1218_s3 }
  0x1e   : > { %p1222_p12 = pneg %p1221_p10  ;;  %p1228_p1 = por %p1227_p0, %p1226_p9 }
  0x20   : > { %p1229_p2 = pnand %p1228_p1, %p1222_p12 }
  0x22   : > { %1232 = shalt.err (!%p1229_p2)
}
  0x23   : > { %s1270_s12 = smov 256   ;;  %s1271_s13 = smov 16  }
  0x24   : > { %1165 = dma.hbm_to_vmem [thread:$0]  (!%p1333_p8), %s1329_s21, 4096, %s1331_s23, %s1338_s25, %s1270_s12, %s1270_s12, %s1271_s13  }
  0x25   : > { %p104_p11 = scmp.lt.s32.totalorder %s1267_s9, 3  ;;  %p1803_p13 = scmp.ge.s32.totalorder %s1267_s9, 1 }
  0x27   : > { %p105_p3 = pnand %p1803_p13, %p104_p11 }
  0x28   : > { %s110_s16 = sand.u32 (!%p105_p3), 1, %s1259_s7   ;;  %v141_v0 = vlaneseq (!%p105_p3) }
  0x29   : > { %108 = sbr.rel (%p105_p3) target bundleno = 512 (0x200), region = 24  ;;  %s944_s17 = sshll.u32 (!%p105_p3), %s110_s16, 8 }
  0x2a   : > { %s111_s18 = scalar_lea.sflag (!%p105_p3), [#allocation3], %s110_s16  ;;  %s1370_s19 = scalar_lea.vmem (!%p105_p3), [#allocation2], %s944_s17 }
  0x30   : > { %1250 = dma.done.wait (%p1320_p7), %s111_s18, 4096  }
  0x31   : > { %1252 = vsyncadd (%p1320_p7), %s111_s18, 4294963200  ;;  %v1272_v1 = vmov 1.0|1.0   ;;  %v1378_v2 = vshrl.u32 %v141_v0, 7  ;;  %v1380_v3 = vand.u32 127, %v141_v0  ;;  %v370_v9 = vld [vmem:[%s1370_s19 + $0x8] sm:$0xff] }
  0x32   : > { %1080 = vmatprep.subr.bf16.mxu0 %v1272_v1  ;;  %1128 = vmatprep.subr.bf16.mxu1 %v1272_v1  ;;  %v386_v10 = vld [vmem:[%s1370_s19 + $0x88] sm:$0xff]  ;;  %v1273_v30 = vmov 0.0|0.0   ;;  %v369_v39 = vld [vmem:[%s1370_s19] sm:$0xff]  ;;  %v372_v41 = vld [vmem:[%s1370_s19 + $0x18] sm:$0xff]  ;;  %s947_s9 = sshll.u32 %s1303_s10, 7  ;;  %s945_s15 = sshll.u32 %s1303_s10, 4 }
  0x33   : > { %v1383_v4 = vadd.s32 8, %v1378_v2  ;;  %vm177_vm0 = vcmp.ge.s32.totalorder %v1380_v3, %v1378_v2  ;;  %v1388_v5 = vadd.s32 16, %v1378_v2  ;;  %v1391_v6 = vadd.s32 24, %v1378_v2  ;;  %465 = vmatprep.mubr.f32.mxu0 %v370_v9  ;;  %513 = vmatprep.mubr.f32.mxu1 %v386_v10  ;;  %v385_v40 = vld [vmem:[%s1370_s19 + $0x80] sm:$0xff]  ;;  %v388_v42 = vld [vmem:[%s1370_s19 + $0x98] sm:$0xff]  ;;  %v371_v43 = vld [vmem:[%s1370_s19 + $0x10] sm:$0xff] }
  0x34   : > { %v1394_v7 = vadd.s32 32, %v1378_v2  ;;  %v1403_v8 = vadd.s32 40, %v1378_v2  ;;  %v1416_v11 = vadd.s32 48, %v1378_v2  ;;  %v1419_v12 = vadd.s32 56, %v1378_v2  ;;  %v387_v44 = vld [vmem:[%s1370_s19 + $0x90] sm:$0xff]  ;;  %v374_v45 = vld [vmem:[%s1370_s19 + $0x28] sm:$0xff] }
  0x35   : > { %vm179_vm1 = vcmp.ge.s32.totalorder %v1380_v3, %v1383_v4  ;;  %vm181_vm2 = vcmp.ge.s32.totalorder %v1380_v3, %v1388_v5  ;;  %vm183_vm3 = vcmp.ge.s32.totalorder %v1380_v3, %v1391_v6  ;;  %v1430_v13 = vadd.s32 64, %v1378_v2  ;;  %v390_v46 = vld [vmem:[%s1370_s19 + $0xa8] sm:$0xff]  ;;  %v373_v47 = vld [vmem:[%s1370_s19 + $0x20] sm:$0xff]  ;;  %v376_v49 = vld [vmem:[%s1370_s19 + $0x38] sm:$0xff]  ;;  %p135_p7 = scmp.lt.s32.totalorder %s945_s15, 31 }
  0x36   : > { %vm1081_vm4 = vmpackc.low %vm179_vm1, %vm177_vm0  ;;  %vm185_vm6 = vcmp.ge.s32.totalorder %v1380_v3, %v1394_v7  ;;  %vm187_vm7 = vcmp.ge.s32.totalorder %v1380_v3, %v1403_v8  ;;  %vm189_vm9 = vcmp.ge.s32.totalorder %v1380_v3, %v1416_v11  ;;  %vm191_vm10 = vcmp.ge.s32.totalorder %v1380_v3, %v1419_v12  ;;  %v389_v48 = vld [vmem:[%s1370_s19 + $0xa0] sm:$0xff]  ;;  %v392_v50 = vld [vmem:[%s1370_s19 + $0xb8] sm:$0xff] }
  0x37   : > { %1082 = vmatpush1.bf16.msk.msra.mxu0 %vm1081_vm4, %v1272_v1  ;;  %1144 = vmatpush1.bf16.msk.msra.mxu1 %vm1081_vm4, %v1272_v1  ;;  %vm1084_vm5 = vmpackc.low %vm183_vm3, %vm181_vm2  ;;  %v1433_v14 = vadd.s32 72, %v1378_v2  ;;  %vm193_vm12 = vcmp.ge.s32.totalorder %v1380_v3, %v1430_v13  ;;  %v1444_v15 = vadd.s32 80, %v1378_v2  ;;  %v1447_v16 = vadd.s32 88, %v1378_v2  ;;  %v375_v51 = vld [vmem:[%s1370_s19 + $0x30] sm:$0xff]  ;;  %v378_v53 = vld [vmem:[%s1370_s19 + $0x48] sm:$0xff]  ;;  %s1809_s15 = smov (!%p135_p7, %s945_s15), 31 }
  0x38   : > { %1083 = vmatprep.subr.bf16.mxu0 %v1272_v1  ;;  %1129 = vmatprep.subr.bf16.mxu1 %v1272_v1  ;;  %vm1087_vm8 = vmpackc.low %vm187_vm7, %vm185_vm6  ;;  %v1458_v17 = vadd.s32 96, %v1378_v2  ;;  %v1461_v18 = vadd.s32 104, %v1378_v2  ;;  %v1472_v19 = vadd.s32 112, %v1378_v2  ;;  %v1475_v20 = vadd.s32 120, %v1378_v2  ;;  %v391_v52 = vld [vmem:[%s1370_s19 + $0xb0] sm:$0xff]  ;;  %v394_v54 = vld [vmem:[%s1370_s19 + $0xc8] sm:$0xff] }
  0x39   : > { %vm1090_vm11 = vmpackc.low %vm191_vm10, %vm189_vm9  ;;  %vm195_vm13 = vcmp.ge.s32.totalorder %v1380_v3, %v1433_v14  ;;  %vm197_vm15 = vcmp.ge.s32.totalorder %v1380_v3, %v1444_v15  ;;  %vm199_vm0 = vcmp.ge.s32.totalorder %v1380_v3, %v1447_v16  ;;  %v158_v21 = vadd.s32 128, %v1378_v2  ;;  %v377_v55 = vld [vmem:[%s1370_s19 + $0x40] sm:$0xff]  ;;  %v380_v57 = vld [vmem:[%s1370_s19 + $0x58] sm:$0xff]  ;;  %s946_s20 = sshll.u32 %s1809_s15, 3 }
  0x3a   : > { %vm1093_vm14 = vmpackc.low %vm195_vm13, %vm193_vm12  ;;  %vm201_vm2 = vcmp.ge.s32.totalorder %v1380_v3, %v1458_v17  ;;  %vm203_vm3 = vcmp.ge.s32.totalorder %v1380_v3, %v1461_v18  ;;  %v159_v22 = vadd.s32 136, %v1378_v2  ;;  %v1480_v23 = vadd.s32 128, %v1380_v3  ;;  %v393_v56 = vld [vmem:[%s1370_s19 + $0xc0] sm:$0xff]  ;;  %v396_v58 = vld [vmem:[%s1370_s19 + $0xd8] sm:$0xff]  ;;  %s1752_s23 = scalar_lea.vmem %s1800_s1, %s946_s20 }
  0x3b   : > { %1085 = vmatpush1.bf16.msk.msra.mxu0 %vm1084_vm5, %v1272_v1  ;;  %1145 = vmatpush1.bf16.msk.msra.mxu1 %vm1084_vm5, %v1272_v1  ;;  %vm1096_vm1 = vmpackc.low %vm199_vm0, %vm197_vm15  ;;  %vm205_vm5 = vcmp.ge.s32.totalorder %v1380_v3, %v1472_v19  ;;  %vm207_vm6 = vcmp.ge.s32.totalorder %v1380_v3, %v1475_v20  ;;  %v160_v24 = vadd.s32 144, %v1378_v2  ;;  %v161_v25 = vadd.s32 152, %v1378_v2  ;;  %v379_v59 = vld [vmem:[%s1370_s19 + $0x50] sm:$0xff]  ;;  %v382_v61 = vld [vmem:[%s1370_s19 + $0x68] sm:$0xff] }
  0x3c   : > { %1086 = vmatprep.subr.bf16.mxu0 %v1272_v1  ;;  %1130 = vmatprep.subr.bf16.mxu1 %v1272_v1  ;;  %vm1099_vm4 = vmpackc.low %vm203_vm3, %vm201_vm2  ;;  %vm210_vm7 = vcmp.ge.s32.totalorder %v1480_v23, %v158_v21  ;;  %v162_v26 = vadd.s32 160, %v1378_v2  ;;  %v163_v27 = vadd.s32 168, %v1378_v2  ;;  %v164_v28 = vadd.s32 176, %v1378_v2  ;;  %v395_v60 = vld [vmem:[%s1370_s19 + $0xd0] sm:$0xff]  ;;  %v398_v62 = vld [vmem:[%s1370_s19 + $0xe8] sm:$0xff] }
  0x3d   : > { %vm1102_vm9 = vmpackc.low %vm207_vm6, %vm205_vm5  ;;  %vm216_vm12 = vcmp.ge.s32.totalorder %v1480_v23, %v161_v25  ;;  %v165_v29 = vadd.s32 184, %v1378_v2  ;;  %v166_v31 = vadd.s32 192, %v1378_v2  ;;  %v167_v32 = vadd.s32 200, %v1378_v2  ;;  %v381_v63 = vld [vmem:[%s1370_s19 + $0x60] sm:$0xff]  ;;  %v400_v9 = vld [vmem:[%s1370_s19 + $0xf8] sm:$0xff] }
  0x3e   : > { %vm220_vm15 = vcmp.ge.s32.totalorder %v1480_v23, %v163_v27  ;;  %v168_v33 = vadd.s32 208, %v1378_v2  ;;  %v169_v34 = vadd.s32 216, %v1378_v2  ;;  %v170_v35 = vadd.s32 224, %v1378_v2  ;;  %v397_v0 = vld [vmem:[%s1370_s19 + $0xe0] sm:$0xff]  ;;  %v383_v10 = vld [vmem:[%s1370_s19 + $0x70] sm:$0xff] }
  0x3f   : > { %1088 = vmatpush1.bf16.msk.msra.mxu0 %vm1087_vm8, %v1272_v1  ;;  %1146 = vmatpush1.bf16.msk.msra.mxu1 %vm1087_vm8, %v1272_v1  ;;  %vm212_vm8 = vcmp.ge.s32.totalorder %v1480_v23, %v159_v22  ;;  %vm224_vm2 = vcmp.ge.s32.totalorder %v1480_v23, %v165_v29  ;;  %vm228_vm5 = vcmp.ge.s32.totalorder %v1480_v23, %v167_v32  ;;  %v171_v36 = vadd.s32 232, %v1378_v2  ;;  %v399_v21 = vld [vmem:[%s1370_s19 + $0xf0] sm:$0xff] }
  0x40   : > { %1089 = vmatprep.subr.bf16.mxu0 %v1272_v1  ;;  %1131 = vmatprep.subr.bf16.mxu1 %v1272_v1  ;;  %vm1104_vm10 = vmpackc.low %vm212_vm8, %vm210_vm7  ;;  %vm230_vm7 = vcmp.ge.s32.totalorder %v1480_v23, %v168_v33  ;;  %vm232_vm8 = vcmp.ge.s32.totalorder %v1480_v23, %v169_v34  ;;  %v172_v37 = vadd.s32 240, %v1378_v2  ;;  %v173_v38 = vadd.s32 248, %v1378_v2 }
  0x41   : > { %v1573_v22 = vstv %s947_s9 }
  0x42   : > { %v571_v25 = vadd.s32 %v1573_v22, %v1430_v13  ;;  %v564_v29 = vadd.s32 %v1573_v22, %v1383_v4  ;;  %v565_v13 = vadd.s32 %v1573_v22, %v1388_v5 }
  0x43   : > { %1091 = vmatpush1.bf16.msk.msra.mxu0 %vm1090_vm11, %v1272_v1  ;;  %1147 = vmatpush1.bf16.msk.msra.mxu1 %vm1090_vm11, %v1272_v1  ;;  %vm214_vm11 = vcmp.ge.s32.totalorder %v1480_v23, %v160_v24  ;;  %v563_v24 = vadd.s32 %v1573_v22, %v1378_v2 }
  0x44   : > { %1092 = vmatprep.subr.bf16.mxu0 %v1272_v1  ;;  %1132 = vmatprep.subr.bf16.mxu1 %v1272_v1  ;;  %vm1107_vm13 = vmpackc.low %vm216_vm12, %vm214_vm11  ;;  %vm236_vm11 = vcmp.ge.s32.totalorder %v1480_v23, %v171_v36  ;;  %v595_v27 = vsub.s32 %v1380_v3, %v571_v25  ;;  %v596_v33 = vsub.s32 %v1480_v23, %v571_v25 }
  0x45   : > { %v581_v34 = vsub.s32 %v1380_v3, %v564_v29  ;;  %v582_v36 = vsub.s32 %v1480_v23, %v564_v29 }
  0x46   : > { %v627_v32 = vadd.s32 1, %v595_v27 }
  0x47   : > { %1094 = vmatpush1.bf16.msk.msra.mxu0 %vm1093_vm14, %v1272_v1  ;;  %1148 = vmatpush1.bf16.msk.msra.mxu1 %vm1093_vm14, %v1272_v1  ;;  %vm218_vm14 = vcmp.ge.s32.totalorder %v1480_v23, %v162_v26  ;;  %v579_v26 = vsub.s32 %v1380_v3, %v563_v24  ;;  %v613_v5 = vadd.s32 1, %v581_v34 }
  0x48   : > { %1095 = vmatprep.subr.bf16.mxu0 %v1272_v1  ;;  %1133 = vmatprep.subr.bf16.mxu1 %v1272_v1  ;;  %vm1110_vm0 = vmpackc.low %vm220_vm15, %vm218_vm14  ;;  %vm240_vm14 = vcmp.ge.s32.totalorder %v1480_v23, %v173_v38  ;;  %v1044_v38 = vcvt.s32.f32 %v627_v32 }
  0x4b   : > { %1097 = vmatpush1.bf16.msk.msra.mxu0 %vm1096_vm1, %v1272_v1  ;;  %1149 = vmatpush1.bf16.msk.msra.mxu1 %vm1096_vm1, %v1272_v1  ;;  %vm222_vm1 = vcmp.ge.s32.totalorder %v1480_v23, %v164_v28  ;;  %v580_v28 = vsub.s32 %v1480_v23, %v563_v24 }
  0x4c   : > { %1098 = vmatprep.subr.bf16.mxu0 %v1272_v1  ;;  %1134 = vmatprep.subr.bf16.mxu1 %v1272_v1  ;;  %vm1113_vm3 = vmpackc.low %vm224_vm2, %vm222_vm1  ;;  %vm675_vm1 = vcmp.gt.s32.totalorder %v627_v32, 0 }
  0x4d   : > { %v612_v2 = vadd.s32 1, %v580_v28 }
  0x4f   : > { %1100 = vmatpush1.bf16.msk.msra.mxu0 %vm1099_vm4, %v1272_v1  ;;  %1150 = vmatpush1.bf16.msk.msra.mxu1 %vm1099_vm4, %v1272_v1  ;;  %vm226_vm4 = vcmp.ge.s32.totalorder %v1480_v23, %v166_v31  ;;  %v611_v31 = vadd.s32 1, %v579_v26  ;;  %vm645_vm2 = vcmp.gt.s32.totalorder %v612_v2, 0  ;;  %v575_v26 = vadd.s32 %v1573_v22, %v1458_v17 }
  0x50   : > { %1101 = vmatprep.subr.bf16.mxu0 %v1272_v1  ;;  %1135 = vmatprep.subr.bf16.mxu1 %v1272_v1  ;;  %vm1116_vm6 = vmpackc.low %vm228_vm5, %vm226_vm4  ;;  %vm647_vm4 = vcmp.gt.s32.totalorder %v613_v5, 0 }
  0x51   : > { %v1012_v4 = vcvt.s32.f32 %v611_v31  ;;  %v603_v17 = vsub.s32 %v1380_v3, %v575_v26  ;;  %v604_v34 = vsub.s32 %v1480_v23, %v575_v26 }
  0x53   : > { %1103 = vmatpush1.bf16.msk.msra.mxu0 %vm1102_vm9, %v1272_v1  ;;  %1151 = vmatpush1.bf16.msk.msra.mxu1 %vm1102_vm9, %v1272_v1  ;;  %vm1119_vm9 = vmpackc.low %vm232_vm8, %vm230_vm7 }
  0x54   : > { %1105 = vmatprep.subr.msk.bf16.mxu0 %vm1104_vm10, %v1272_v1  ;;  %1136 = vmatprep.subr.msk.bf16.mxu1 %vm1104_vm10, %v1272_v1  ;;  %vm234_vm10 = vcmp.ge.s32.totalorder %v1480_v23, %v170_v35 }
  0x55   : > { %vm1122_vm12 = vmpackc.low %vm236_vm11, %vm234_vm10 }
  0x57   : > { %1106 = vmatpush1.bf16.msra.mxu0 %v1273_v30  ;;  %1152 = vmatpush1.bf16.msra.mxu1 %v1273_v30 }
  0x58   : > { %1108 = vmatprep.subr.msk.bf16.mxu0 %vm1107_vm13, %v1272_v1  ;;  %1137 = vmatprep.subr.msk.bf16.mxu1 %vm1107_vm13, %v1272_v1  ;;  %vm238_vm13 = vcmp.ge.s32.totalorder %v1480_v23, %v172_v37 }
  0x59   : > { %vm1125_vm15 = vmpackc.low %vm240_vm14, %vm238_vm13 }
  0x5b   : > { %1109 = vmatpush1.bf16.msra.mxu0 %v1273_v30  ;;  %1153 = vmatpush1.bf16.msra.mxu1 %v1273_v30 }
  0x5c   : > { %1111 = vmatprep.subr.msk.bf16.mxu0 %vm1110_vm0, %v1272_v1  ;;  %1138 = vmatprep.subr.msk.bf16.mxu1 %vm1110_vm0, %v1272_v1  ;;  %vm643_vm0 = vcmp.gt.s32.totalorder %v611_v31, 0 }
  0x5f   : > { %1112 = vmatpush1.bf16.msra.mxu0 %v1273_v30  ;;  %1154 = vmatpush1.bf16.msra.mxu1 %v1273_v30 }
  0x60   : > { %1114 = vmatprep.subr.msk.bf16.mxu0 %vm1113_vm3, %v1272_v1  ;;  %1139 = vmatprep.subr.msk.bf16.mxu1 %vm1113_vm3, %v1272_v1 }
  0x63   : > { %1115 = vmatpush1.bf16.msra.mxu0 %v1273_v30  ;;  %1155 = vmatpush1.bf16.msra.mxu1 %v1273_v30 }
  0x64   : > { %1117 = vmatprep.subr.msk.bf16.mxu0 %vm1116_vm6, %v1272_v1  ;;  %1140 = vmatprep.subr.msk.bf16.mxu1 %vm1116_vm6, %v1272_v1 }
  0x67   : > { %1118 = vmatpush1.bf16.msra.mxu0 %v1273_v30  ;;  %1156 = vmatpush1.bf16.msra.mxu1 %v1273_v30 }
  0x68   : > { %1120 = vmatprep.subr.msk.bf16.mxu0 %vm1119_vm9, %v1272_v1  ;;  %1141 = vmatprep.subr.msk.bf16.mxu1 %vm1119_vm9, %v1272_v1 }
  0x6b   : > { %1121 = vmatpush1.bf16.msra.mxu0 %v1273_v30  ;;  %1157 = vmatpush1.bf16.msra.mxu1 %v1273_v30 }
  0x6c   : > { %1123 = vmatprep.subr.msk.bf16.mxu0 %vm1122_vm12, %v1272_v1  ;;  %1142 = vmatprep.subr.msk.bf16.mxu1 %vm1122_vm12, %v1272_v1 }
  0x6f   : > { %1124 = vmatpush1.bf16.msra.mxu0 %v1273_v30  ;;  %1158 = vmatpush1.bf16.msra.mxu1 %v1273_v30 }
  0x70   : > { %1126 = vmatprep.subr.msk.bf16.mxu0 %vm1125_vm15, %v1272_v1  ;;  %1143 = vmatprep.subr.msk.bf16.mxu1 %vm1125_vm15, %v1272_v1  ;;  %v384_v1 = vld [vmem:[%s1370_s19 + $0x78] sm:$0xff] }
  0x73   : > { %1127 = vmatpush1.bf16.msra.mxu0 %v1273_v30  ;;  %1159 = vmatpush1.bf16.msra.mxu1 %v1273_v30  ;;  %v572_v30 = vadd.s32 %v1573_v22, %v1433_v14  ;;  %v628_v14 = vadd.s32 1, %v596_v33 }
  0x75   : > { %v597_v35 = vsub.s32 %v1380_v3, %v572_v30  ;;  %v598_v37 = vsub.s32 %v1480_v23, %v572_v30  ;;  %vm677_vm3 = vcmp.gt.s32.totalorder %v628_v14, 0 }
  0x76   : > { %466 = vmatmul.mubr.f32.vlgmr.msra.gmra.mrb[0].mxu0 %v369_v39  ;;  %514 = vmatmul.mubr.f32.vlgmr.msra.gmra.mrb[0].mxu1 %v385_v40  ;;  %v1014_v39 = vcvt.s32.f32 %v612_v2  ;;  %v583_v40 = vsub.s32 %v1380_v3, %v565_v13 }
  0x77   : > { %471 = vmatprep.mubr.f32.mxu0 %v372_v41  ;;  %519 = vmatprep.mubr.f32.mxu1 %v388_v42  ;;  %v573_v41 = vadd.s32 %v1573_v22, %v1444_v15  ;;  %v629_v42 = vadd.s32 1, %v597_v35  ;;  %v576_v35 = vadd.s32 %v1573_v22, %v1461_v18 }
  0x79   : > { %v599_v15 = vsub.s32 %v1380_v3, %v573_v41  ;;  %vm679_vm5 = vcmp.gt.s32.totalorder %v629_v42, 0 }
  0x7a   : > { %472 = vmatmul.mubr.f32.gmra.mrb[2].mxu0 %v371_v43  ;;  %520 = vmatmul.mubr.f32.gmra.mrb[2].mxu1 %v387_v44  ;;  %v614_v43 = vadd.s32 1, %v582_v36  ;;  %v630_v44 = vadd.s32 1, %v598_v37 }
  0x7b   : > { %477 = vmatprep.mubr.f32.mxu0 %v374_v45  ;;  %525 = vmatprep.mubr.f32.mxu1 %v390_v46  ;;  %v566_v45 = vadd.s32 %v1573_v22, %v1391_v6  ;;  %v1598_v46 = vsel %vm643_vm0, %v1012_v4, 0.0 }
  0x7c   : > { %v1018_v6 = vcvt.s32.f32 %v614_v43  ;;  %vm649_vm6 = vcmp.gt.s32.totalorder %v614_v43, 0  ;;  %vm681_vm7 = vcmp.gt.s32.totalorder %v630_v44, 0  ;;  %v636_v43 = vadd.s32 1, %v604_v34 }
  0x7e   : > { %478 = vmatmul.mubr.f32.gmra.mrb[4].mxu0 %v373_v47  ;;  %526 = vmatmul.mubr.f32.gmra.mrb[4].mxu1 %v389_v48  ;;  %v1600_v47 = vsel %vm675_vm1, %v1044_v38, 0.0  ;;  %v1046_v48 = vcvt.s32.f32 %v628_v14 }
  0x7f   : > { %483 = vmatprep.mubr.f32.mxu0 %v376_v49  ;;  %531 = vmatprep.mubr.f32.mxu1 %v392_v50  ;;  %v584_v49 = vsub.s32 %v1480_v23, %v565_v13  ;;  %v1603_v50 = vsel %vm645_vm2, %v1014_v39, 0.0  ;;  %v569_v39 = vadd.s32 %v1573_v22, %v1416_v11  ;;  %v606_v11 = vsub.s32 %v1480_v23, %v576_v35 }
  0x82   : > { %484 = vmatmul.mubr.f32.gmra.mrb[6].mxu0 %v375_v51  ;;  %532 = vmatmul.mubr.f32.gmra.mrb[6].mxu1 %v391_v52  ;;  %v615_v51 = vadd.s32 1, %v583_v40  ;;  %v1016_v52 = vcvt.s32.f32 %v613_v5 }
  0x83   : > { %489 = vmatprep.mubr.f32.mxu0 %v378_v53  ;;  %537 = vmatprep.mubr.f32.mxu1 %v394_v54  ;;  %v600_v53 = vsub.s32 %v1480_v23, %v573_v41  ;;  %v1048_v54 = vcvt.s32.f32 %v629_v42  ;;  %v635_v42 = vadd.s32 1, %v603_v17 }
  0x84   : > { %vm651_vm8 = vcmp.gt.s32.totalorder %v615_v51, 0 }
  0x85   : > { %vm691_vm2 = vcmp.gt.s32.totalorder %v635_v42, 0 }
  0x86   : > { %490 = vmatmul.mubr.f32.gmra.mrb[8].mxu0 %v377_v55  ;;  %538 = vmatmul.mubr.f32.gmra.mrb[8].mxu1 %v393_v56  ;;  %v1050_v55 = vcvt.s32.f32 %v630_v44  ;;  %v585_v56 = vsub.s32 %v1380_v3, %v566_v45  ;;  %v605_v44 = vsub.s32 %v1380_v3, %v576_v35 }
  0x87   : > { %495 = vmatprep.mubr.f32.mxu0 %v380_v57  ;;  %543 = vmatprep.mubr.f32.mxu1 %v396_v58  ;;  %v616_v57 = vadd.s32 1, %v584_v49  ;;  %v574_v58 = vadd.s32 %v1573_v22, %v1447_v16 }
  0x88   : > { %v1623_v16 = vsel %vm681_vm7, %v1050_v55, 0.0  ;;  %v1062_v55 = vcvt.s32.f32 %v636_v43 }
  0x89   : > { %vm653_vm9 = vcmp.gt.s32.totalorder %v616_v57, 0  ;;  %v1022_v24 = vcvt.s32.f32 %v616_v57  ;;  %v601_v25 = vsub.s32 %v1380_v3, %v574_v58  ;;  %v602_v30 = vsub.s32 %v1480_v23, %v574_v58 }
  0x8a   : > { %496 = vmatmul.mubr.f32.gmra.mrb[10].mxu0 %v379_v59  ;;  %544 = vmatmul.mubr.f32.gmra.mrb[10].mxu1 %v395_v60  ;;  %v1610_v59 = vsel %vm677_vm3, %v1046_v48, 0.0  ;;  %v1020_v60 = vcvt.s32.f32 %v615_v51  ;;  %vm693_vm3 = vcmp.gt.s32.totalorder %v636_v43, 0 }
  0x8b   : > { %501 = vmatprep.mubr.f32.mxu0 %v382_v61  ;;  %549 = vmatprep.mubr.f32.mxu1 %v398_v62  ;;  %v631_v61 = vadd.s32 1, %v599_v15  ;;  %v586_v62 = vsub.s32 %v1480_v23, %v566_v45  ;;  %v633_v13 = vadd.s32 1, %v601_v25  ;;  %v634_v38 = vadd.s32 1, %v602_v30 }
  0x8c   : > { %v1628_v27 = vsel %vm651_vm8, %v1020_v60, 0.0  ;;  %v591_v15 = vsub.s32 %v1380_v3, %v569_v39  ;;  %v638_v60 = vadd.s32 1, %v606_v11  ;;  %v570_v11 = vadd.s32 %v1573_v22, %v1419_v12 }
  0x8d   : > { %vm683_vm10 = vcmp.gt.s32.totalorder %v631_v61, 0  ;;  %v618_v28 = vadd.s32 1, %v586_v62  ;;  %v1052_v29 = vcvt.s32.f32 %v631_v61  ;;  %vm687_vm14 = vcmp.gt.s32.totalorder %v633_v13, 0 }
  0x8e   : > { %502 = vmatmul.mubr.f32.gmra.mrb[12].mxu0 %v381_v63  ;;  %550 = vmatmul.mubr.f32.gmra.mrb[12].mxu1 %v397_v0  ;;  %v1614_v63 = vsel %vm647_vm4, %v1016_v52, 0.0  ;;  %v632_v0 = vadd.s32 1, %v600_v53  ;;  %v1056_v45 = vcvt.s32.f32 %v633_v13  ;;  %vm689_vm15 = vcmp.gt.s32.totalorder %v634_v38, 0 }
  0x8f   : > { %507 = vmatprep.mubr.f32.mxu0 %v384_v1  ;;  %555 = vmatprep.mubr.f32.mxu1 %v400_v9  ;;  %v567_v1 = vadd.s32 %v1573_v22, %v1394_v7  ;;  %v1619_v9 = vsel %vm679_vm5, %v1048_v54, 0.0  ;;  %v568_v7 = vadd.s32 %v1573_v22, %v1403_v8  ;;  %v1640_v8 = vsel %vm653_vm9, %v1022_v24, 0.0 }
  0x90   : > { %vm685_vm11 = vcmp.gt.s32.totalorder %v632_v0, 0  ;;  %v1054_v32 = vcvt.s32.f32 %v632_v0  ;;  %vm657_vm13 = vcmp.gt.s32.totalorder %v618_v28, 0  ;;  %v1026_v4 = vcvt.s32.f32 %v618_v28 }
  0x91   : > { %v587_v31 = vsub.s32 %v1380_v3, %v567_v1  ;;  %v588_v2 = vsub.s32 %v1480_v23, %v567_v1  ;;  %v589_v36 = vsub.s32 %v1380_v3, %v568_v7  ;;  %v590_v37 = vsub.s32 %v1480_v23, %v568_v7 }
  0x92   : > { %508 = vmatmul.mubr.f32.gmra.mrb[14].mxu0 %v383_v10  ;;  %556 = vmatmul.mubr.f32.gmra.mrb[14].mxu1 %v399_v21  ;;  %v1621_v10 = vsel %vm649_vm6, %v1018_v6, 0.0  ;;  %v617_v21 = vadd.s32 1, %v585_v56  ;;  %v1647_v40 = vsel %vm683_vm10, %v1052_v29, 0.0  ;;  %v1650_v41 = vsel %vm685_vm11, %v1054_v32, 0.0 }
  0x93   : > { %v619_v14 = vadd.s32 1, %v587_v31  ;;  %v620_v5 = vadd.s32 1, %v588_v2  ;;  %v621_v48 = vadd.s32 1, %v589_v36  ;;  %v622_v49 = vadd.s32 1, %v590_v37 }
  0x94   : > { %vm655_vm12 = vcmp.gt.s32.totalorder %v617_v21, 0  ;;  %v1024_v33 = vcvt.s32.f32 %v617_v21  ;;  %v1058_v51 = vcvt.s32.f32 %v634_v38  ;;  %v592_v54 = vsub.s32 %v1480_v23, %v569_v39 }
  0x95   : > { %vm659_vm0 = vcmp.gt.s32.totalorder %v619_v14, 0  ;;  %v1028_v52 = vcvt.s32.f32 %v619_v14  ;;  %vm661_vm1 = vcmp.gt.s32.totalorder %v620_v5, 0  ;;  %v1030_v53 = vcvt.s32.f32 %v620_v5 }
  0x96   : > { %v1653_v18 = vsel %vm655_vm12, %v1024_v33, 0.0  ;;  %v1060_v6 = vcvt.s32.f32 %v635_v42  ;;  %v637_v56 = vadd.s32 1, %v605_v44  ;;  %v1032_v57 = vcvt.s32.f32 %v621_v48 }
  0x97   : > { %v1034_v58 = vcvt.s32.f32 %v622_v49  ;;  %v1660_v61 = vsel %vm657_vm13, %v1026_v4, 0.0  ;;  %vm663_vm4 = vcmp.gt.s32.totalorder %v621_v48, 0  ;;  %vm665_vm5 = vcmp.gt.s32.totalorder %v622_v49, 0 }
  0x98   : > { %v623_v62 = vadd.s32 1, %v591_v15  ;;  %v1663_v0 = vsel %vm687_vm14, %v1056_v45, 0.0  ;;  %v1666_v1 = vsel %vm689_vm15, %v1058_v51, 0.0  ;;  %v1669_v21 = vsel %vm659_vm0, %v1028_v52, 0.0 }
  0x99   : > { %v624_v24 = vadd.s32 1, %v592_v54  ;;  %v1672_v25 = vsel %vm661_vm1, %v1030_v53, 0.0  ;;  %v1675_v26 = vsel %vm691_vm2, %v1060_v6, 0.0  ;;  %v1677_v28 = vsel %vm693_vm3, %v1062_v55, 0.0 }
  0x9a   : > { %v1064_v7 = vcvt.s32.f32 %v637_v56  ;;  %v1679_v31 = vsel %vm663_vm4, %v1032_v57, 0.0  ;;  %v1681_v32 = vsel %vm665_vm5, %v1034_v58, 0.0  ;;  %vm695_vm6 = vcmp.gt.s32.totalorder %v637_v56, 0 }
  0x9b   : > { %v1066_v33 = vcvt.s32.f32 %v638_v60  ;;  %vm697_vm7 = vcmp.gt.s32.totalorder %v638_v60, 0  ;;  %v1036_v35 = vcvt.s32.f32 %v623_v62  ;;  %vm667_vm8 = vcmp.gt.s32.totalorder %v623_v62, 0 }
  0x9c   : > { %vm669_vm9 = vcmp.gt.s32.totalorder %v624_v24, 0  ;;  %v1687_v14 = vsel %vm695_vm6, %v1064_v7, 0.0  ;;  %v1038_v39 = vcvt.s32.f32 %v624_v24  ;;  %v577_v44 = vadd.s32 %v1573_v22, %v1472_v19 }
  0x9d   : > { %v1696_v49 = vsel %vm667_vm8, %v1036_v35, 0.0  ;;  %v593_v24 = vsub.s32 %v1380_v3, %v570_v11  ;;  %v594_v7 = vsub.s32 %v1480_v23, %v570_v11  ;;  %vm851_vm0 = vcmask 7168  }
  0x9e   : > { %v607_v12 = vsub.s32 %v1380_v3, %v577_v44 }
 0x149   : > { %v467_v29 = vpop.f32.mrb[0].mxu0  ;;  %v515_v30 = vpop.f32.mrb[0].mxu1 }
 0x14a   : > { %v739_v2 = vsub.f32 %v467_v29, %v1598_v46  ;;  %v755_v13 = vsub.f32 %v515_v30, %v1600_v47  ;;  %v469_v17 = vpop.f32.mrb[1].mxu0  ;;  %v517_v34 = vpop.f32.mrb[1].mxu1  ;;  %v1689_v47 = vsel %vm697_vm7, %v1066_v33, 0.0 }
 0x14b   : > { %v740_v36 = vsub.f32 %v469_v17, %v1603_v50  ;;  %v756_v37 = vsub.f32 %v517_v34, %v1610_v59 }
 0x14c   : > { %v771_v4 = vmul.f32 %v739_v2, %v739_v2  ;;  %v787_v38 = vmul.f32 %v755_v13, %v755_v13 }
 0x14d   : > { %v772_v5 = vmul.f32 %v740_v36, %v740_v36  ;;  %v788_v42 = vmul.f32 %v756_v37, %v756_v37  ;;  %v473_v46 = vpop.f32.mrb[2].mxu0  ;;  %v521_v43 = vpop.f32.mrb[2].mxu1  ;;  %v639_v36 = vadd.s32 1, %v607_v12 }
 0x14e   : > { %v741_v50 = vsub.f32 %v473_v46, %v1614_v63  ;;  %v757_v59 = vsub.f32 %v521_v43, %v1619_v9  ;;  %v475_v45 = vpop.f32.mrb[3].mxu0  ;;  %v523_v48 = vpop.f32.mrb[3].mxu1  ;;  %v1703_v63 = vsel %vm669_vm9, %v1038_v39, 0.0  ;;  %v578_v9 = vadd.s32 %v1573_v22, %v1475_v20 }
 0x14f   : > { %v742_v51 = vsub.f32 %v475_v45, %v1621_v10  ;;  %v758_v15 = vsub.f32 %v523_v48, %v1623_v16  ;;  %v803_v52 = vadd.f32 %v772_v5, %v771_v4  ;;  %v827_v53 = vadd.f32 %v788_v42, %v787_v38 }
 0x150   : > { %v773_v54 = vmul.f32 %v741_v50, %v741_v50  ;;  %v789_v19 = vmul.f32 %v757_v59, %v757_v59  ;;  %v608_v10 = vsub.s32 %v1480_v23, %v577_v44  ;;  %v609_v13 = vsub.s32 %v1380_v3, %v578_v9 }
 0x151   : > { %v774_v6 = vmul.f32 %v742_v51, %v742_v51  ;;  %v790_v55 = vmul.f32 %v758_v15, %v758_v15  ;;  %804 = vadd.xlane.f32.xlu0 %v803_v52  ;;  %v479_v56 = vpop.f32.mrb[4].mxu0  ;;  %v527_v57 = vpop.f32.mrb[4].mxu1  ;;  %v1719_v39 = vadd.s32 1, %v593_v24  ;;  %v1721_v5 = vadd.s32 1, %v594_v7 }
 0x152   : > { %v743_v16 = vsub.f32 %v479_v56, %v1628_v27  ;;  %v481_v58 = vpop.f32.mrb[5].mxu0  ;;  %v759_v60 = vsub.f32 %v527_v57, %v1647_v40  ;;  %v529_v62 = vpop.f32.mrb[5].mxu1  ;;  %v610_v27 = vsub.s32 %v1480_v23, %v578_v9  ;;  %v640_v37 = vadd.s32 1, %v608_v10 }
 0x153   : > { %v744_v20 = vsub.f32 %v481_v58, %v1640_v8  ;;  %v830_v22 = vadd.f32 %v790_v55, %v789_v19  ;;  %v760_v29 = vsub.f32 %v529_v62, %v1650_v41  ;;  %v806_v30 = vadd.f32 %v774_v6, %v773_v54 }
 0x154   : > { %v775_v33 = vmul.f32 %v743_v16, %v743_v16  ;;  %v791_v2 = vmul.f32 %v759_v60, %v759_v60  ;;  %v641_v50 = vadd.s32 1, %v609_v13  ;;  %v1725_v59 = vadd.s32 1, %v610_v27 }
 0x155   : > { %v776_v17 = vmul.f32 %v744_v20, %v744_v20  ;;  %831 = vadd.xlane.f32.xlu1 %v830_v22  ;;  %v792_v40 = vmul.f32 %v760_v29, %v760_v29  ;;  %828 = vadd.xlane.f32.xlu0 %v827_v53  ;;  %v485_v34 = vpop.f32.mrb[6].mxu0  ;;  %v533_v35 = vpop.f32.mrb[6].mxu1  ;;  %vm699_vm10 = vcmp.gt.s32.totalorder %v639_v36, 0  ;;  %v1068_v11 = vcvt.s32.f32 %v639_v36 }
 0x156   : > { %v745_v8 = vsub.f32 %v485_v34, %v1653_v18  ;;  %v487_v4 = vpop.f32.mrb[7].mxu0  ;;  %v761_v41 = vsub.f32 %v533_v35, %v1663_v0  ;;  %v535_v38 = vpop.f32.mrb[7].mxu1  ;;  %vm701_vm11 = vcmp.gt.s32.totalorder %v640_v37, 0  ;;  %v1070_v52 = vcvt.s32.f32 %v640_v37 }
 0x157   : > { %v746_v3 = vsub.f32 %v487_v4, %v1660_v61  ;;  %v762_v23 = vsub.f32 %v535_v38, %v1666_v1  ;;  %v809_v42 = vadd.f32 %v776_v17, %v775_v33  ;;  %v833_v46 = vadd.f32 %v792_v40, %v791_v2 }
 0x158   : > { %v777_v43 = vmul.f32 %v745_v8, %v745_v8  ;;  %v793_v44 = vmul.f32 %v761_v41, %v761_v41  ;;  %vm671_vm12 = vcmp.gt.s32.totalorder %v1719_v39, 0  ;;  %v1040_v56 = vcvt.s32.f32 %v1719_v39 }
 0x159   : > { %v778_v18 = vmul.f32 %v746_v3, %v746_v3  ;;  %v794_v45 = vmul.f32 %v762_v23, %v762_v23  ;;  %807 = vadd.xlane.f32.xlu0 %v806_v30  ;;  %810 = vadd.xlane.f32.xlu1 %v809_v42  ;;  %v491_v0 = vpop.f32.mrb[8].mxu0  ;;  %v539_v48 = vpop.f32.mrb[8].mxu1  ;;  %v1069_v10 = vsel %vm699_vm10, %v1068_v11, 0.0  ;;  %vm703_vm13 = vcmp.gt.s32.totalorder %v641_v50, 0 }
 0x15a   : > { %v747_v51 = vsub.f32 %v491_v0, %v1669_v21  ;;  %v493_v61 = vpop.f32.mrb[9].mxu0  ;;  %v763_v1 = vsub.f32 %v539_v48, %v1675_v26  ;;  %v541_v15 = vpop.f32.mrb[9].mxu1  ;;  %v1072_v62 = vcvt.s32.f32 %v641_v50  ;;  %v1071_v33 = vsel %vm701_vm11, %v1070_v52, 0.0 }
 0x15b   : > { %v748_v53 = vsub.f32 %v493_v61, %v1672_v25  ;;  %v764_v54 = vsub.f32 %v541_v15, %v1677_v28  ;;  %v812_v19 = vadd.f32 %v778_v18, %v777_v43  ;;  %v836_v9 = vadd.f32 %v794_v45, %v793_v44 }
 0x15c   : > { %v779_v6 = vmul.f32 %v747_v51, %v747_v51  ;;  %v795_v55 = vmul.f32 %v763_v1, %v763_v1  ;;  %v1042_v25 = vcvt.s32.f32 %v1721_v5  ;;  %v1074_v2 = vcvt.s32.f32 %v1725_v59 }
 0x15d   : > { %v780_v57 = vmul.f32 %v748_v53, %v748_v53  ;;  %v796_v21 = vmul.f32 %v764_v54, %v764_v54  ;;  %834 = vadd.xlane.f32.xlu0 %v833_v46  ;;  %813 = vadd.xlane.f32.xlu1 %v812_v19  ;;  %v497_v26 = vpop.f32.mrb[10].mxu0  ;;  %v545_v12 = vpop.f32.mrb[10].mxu1  ;;  %vm673_vm14 = vcmp.gt.s32.totalorder %v1721_v5, 0  ;;  %vm705_vm15 = vcmp.gt.s32.totalorder %v1725_v59, 0 }
 0x15e   : > { %v749_v28 = vsub.f32 %v497_v26, %v1679_v31  ;;  %v499_v16 = vpop.f32.mrb[11].mxu0  ;;  %v765_v58 = vsub.f32 %v545_v12, %v1687_v14  ;;  %v547_v60 = vpop.f32.mrb[11].mxu1  ;;  %v1041_v34 = vsel %vm671_vm12, %v1040_v56, 0.0  ;;  %v1073_v35 = vsel %vm703_vm13, %v1072_v62, 0.0 }
 0x15f   : > { %v750_v24 = vsub.f32 %v499_v16, %v1681_v32  ;;  %v766_v7 = vsub.f32 %v547_v60, %v1689_v47  ;;  %v815_v20 = vadd.f32 %v780_v57, %v779_v6  ;;  %v839_v22 = vadd.f32 %v796_v21, %v795_v55 }
 0x160   : > { %v781_v29 = vmul.f32 %v749_v28, %v749_v28  ;;  %v797_v30 = vmul.f32 %v765_v58, %v765_v58  ;;  %v1043_v5 = vsel %vm673_vm14, %v1042_v25, 0.0  ;;  %v1075_v3 = vsel %vm705_vm15, %v1074_v2, 0.0 }
 0x161   : > { %v782_v13 = vmul.f32 %v750_v24, %v750_v24  ;;  %v798_v31 = vmul.f32 %v766_v7, %v766_v7  ;;  %837 = vadd.xlane.f32.xlu1 %v836_v9  ;;  %816 = vadd.xlane.f32.xlu0 %v815_v20  ;;  %v503_v14 = vpop.f32.mrb[12].mxu0  ;;  %v551_v27 = vpop.f32.mrb[12].mxu1 }
 0x162   : > { %v751_v32 = vsub.f32 %v503_v14, %v1696_v49  ;;  %v505_v47 = vpop.f32.mrb[13].mxu0  ;;  %v767_v17 = vsub.f32 %v551_v27, %v1069_v10  ;;  %v553_v40 = vpop.f32.mrb[13].mxu1 }
 0x163   : > { %v752_v36 = vsub.f32 %v505_v47, %v1703_v63  ;;  %v768_v37 = vsub.f32 %v553_v40, %v1071_v33  ;;  %v818_v8 = vadd.f32 %v782_v13, %v781_v29  ;;  %v842_v4 = vadd.f32 %v798_v31, %v797_v30 }
 0x164   : > { %v783_v41 = vmul.f32 %v751_v32, %v751_v32  ;;  %v799_v38 = vmul.f32 %v767_v17, %v767_v17 }
 0x165   : > { %v784_v23 = vmul.f32 %v752_v36, %v752_v36  ;;  %v800_v42 = vmul.f32 %v768_v37, %v768_v37  ;;  %840 = vadd.xlane.f32.xlu0 %v839_v22  ;;  %819 = vadd.xlane.f32.xlu1 %v818_v8  ;;  %v509_v49 = vpop.f32.mrb[14].mxu0  ;;  %v557_v46 = vpop.f32.mrb[14].mxu1 }
 0x166   : > { %v753_v43 = vsub.f32 %v509_v49, %v1041_v34  ;;  %v511_v39 = vpop.f32.mrb[15].mxu0  ;;  %v769_v44 = vsub.f32 %v557_v46, %v1073_v35  ;;  %v559_v50 = vpop.f32.mrb[15].mxu1 }
 0x167   : > { %v754_v59 = vsub.f32 %v511_v39, %v1043_v5  ;;  %v770_v63 = vsub.f32 %v559_v50, %v1075_v3  ;;  %v821_v18 = vadd.f32 %v784_v23, %v783_v41  ;;  %v845_v45 = vadd.f32 %v800_v42, %v799_v38 }
 0x168   : > { %v785_v0 = vmul.f32 %v753_v43, %v753_v43  ;;  %v801_v48 = vmul.f32 %v769_v44, %v769_v44 }
 0x169   : > { %v786_v11 = vmul.f32 %v754_v59, %v754_v59  ;;  %v802_v51 = vmul.f32 %v770_v63, %v770_v63  ;;  %843 = vadd.xlane.f32.xlu1 %v842_v4  ;;  %822 = vadd.xlane.f32.xlu0 %v821_v18 }
 0x16b   : > { %v824_v61 = vadd.f32 %v786_v11, %v785_v0  ;;  %v848_v1 = vadd.f32 %v802_v51, %v801_v48 }
 0x16d   : > { %846 = vadd.xlane.f32.xlu0 %v845_v45  ;;  %825 = vadd.xlane.f32.xlu1 %v824_v61 }
 0x171   : > { %849 = vadd.xlane.f32.xlu1 %v848_v1 }
 0x1de   : > { %v805_v15 = vpop.xlane.xlu0 %804 }
 0x1df   : > { %852 = vst.msk [vmem:[%s1752_s23] sm:$0xff] %vm851_vm0, %v805_v15 }
 0x1e2   : > { %v832_v52 = vpop.xlane.xlu1 %831  ;;  %v829_v53 = vpop.xlane.xlu0 %828 }
 0x1e3   : > { %861 = vst.msk [vmem:[%s1752_s23 + $0x48] sm:$0xff] %vm851_vm0, %v832_v52  ;;  %860 = vst.msk [vmem:[%s1752_s23 + $0x40] sm:$0xff] %vm851_vm0, %v829_v53 }
 0x1e6   : > { %v808_v54 = vpop.xlane.xlu0 %807  ;;  %v811_v19 = vpop.xlane.xlu1 %810 }
 0x1e7   : > { %853 = vst.msk [vmem:[%s1752_s23 + $0x8] sm:$0xff] %vm851_vm0, %v808_v54  ;;  %854 = vst.msk [vmem:[%s1752_s23 + $0x10] sm:$0xff] %vm851_vm0, %v811_v19 }
 0x1ea   : > { %v835_v9 = vpop.xlane.xlu0 %834  ;;  %v814_v6 = vpop.xlane.xlu1 %813 }
 0x1eb   : > { %862 = vst.msk [vmem:[%s1752_s23 + $0x50] sm:$0xff] %vm851_vm0, %v835_v9  ;;  %855 = vst.msk [vmem:[%s1752_s23 + $0x18] sm:$0xff] %vm851_vm0, %v814_v6 }
 0x1ee   : > { %v838_v55 = vpop.xlane.xlu1 %837  ;;  %v817_v56 = vpop.xlane.xlu0 %816 }
 0x1ef   : > { %863 = vst.msk [vmem:[%s1752_s23 + $0x58] sm:$0xff] %vm851_vm0, %v838_v55  ;;  %856 = vst.msk [vmem:[%s1752_s23 + $0x20] sm:$0xff] %vm851_vm0, %v817_v56 }
 0x1f2   : > { %v841_v57 = vpop.xlane.xlu0 %840  ;;  %v820_v21 = vpop.xlane.xlu1 %819 }
 0x1f3   : > { %864 = vst.msk [vmem:[%s1752_s23 + $0x60] sm:$0xff] %vm851_vm0, %v841_v57  ;;  %857 = vst.msk [vmem:[%s1752_s23 + $0x28] sm:$0xff] %vm851_vm0, %v820_v21 }
 0x1f6   : > { %v844_v26 = vpop.xlane.xlu1 %843  ;;  %v823_v12 = vpop.xlane.xlu0 %822 }
 0x1f7   : > { %865 = vst.msk [vmem:[%s1752_s23 + $0x68] sm:$0xff] %vm851_vm0, %v844_v26  ;;  %858 = vst.msk [vmem:[%s1752_s23 + $0x30] sm:$0xff] %vm851_vm0, %v823_v12 }
 0x1fa   : > { %v847_v10 = vpop.xlane.xlu0 %846  ;;  %v826_v25 = vpop.xlane.xlu1 %825 }
 0x1fb   : > { %866 = vst.msk [vmem:[%s1752_s23 + $0x70] sm:$0xff] %vm851_vm0, %v847_v10  ;;  %859 = vst.msk [vmem:[%s1752_s23 + $0x38] sm:$0xff] %vm851_vm0, %v826_v25 }
 0x1fe   : > { %v850_v28 = vpop.xlane.xlu1 %849 }
 0x1ff   : > { %867 = vst.msk [vmem:[%s1752_s23 + $0x78] sm:$0xff] %vm851_vm0, %v850_v28 }
 0x200 PF: > { %p11_p8 = scmp.ge.s32.totalorder %s1306_s11, 4   ;;  %s1804_s6 = smov %s1259_s7 }
 0x201   : > { %s1805_s7 = smov %s1263_s8  ;;  %s1806_s8 = smov %s1316_s14 }
 0x202   : > { %s1807_s9 = smov %s1306_s11  ;;  %13 = sbr.rel (!%p11_p8) target bundleno = 3 (0x3), region = 64 }
 0x209   :  { %890 = vsyncpa [#allocation3], 1 }
 0x20a   :  { %892 = vsyncpa [#allocation3 + $0x1], 1 }

</bundles_post_ra>
